<compile_context>
chip_gen: v7x
topology: tpu7x:2x2x1
jax: 0.10.0
libtpu: 0.0.40
codegen_flags: <defaults>
</compile_context>

<pallas_src>
import jax
import jax.numpy as jnp
from jax.experimental import pallas as pl
from jax.experimental.pallas import tpu as pltpu


# --------------------------------------------------------------------------- #
# Kernel
# --------------------------------------------------------------------------- #
def _bias_correction_kernel(w_ref, b_ref, x_ref, o_ref):
    # w_ref, b_ref: shape-(1,) f32 scalars in SMEM; x_ref / o_ref: (TB, W) VMEM tiles.
    w = w_ref[0]
    b = b_ref[0]
    o_ref[...] = (x_ref[...] * w + b).astype(o_ref.dtype)


# --------------------------------------------------------------------------- #
# Helpers
# --------------------------------------------------------------------------- #
_LANE = 128
_W_CANDIDATES = (2048, 1024, 512, 256, 128)   # lane-dense widths, widest first


def _cdiv(a, b):
    return -(-a // b)


def _round_up(a, b):
    return _cdiv(a, b) * b


def _target_tile_bytes():
    """Per-generation tile-size target (keeps 2 in + 2 out buffers in scoped VMEM)."""
    kind = ""
    try:
        kind = jax.devices()[0].device_kind.lower()
    except Exception:
        pass
    if "v7" in kind:
        return 6 << 20          # v7x: 3.2 TB/s HBM -> amortize ~0.35us/step overhead
    if "v5e" in kind or "v5 lite" in kind or "v5lite" in kind:
        return 3 << 20          # v5e: 16 MiB default scoped VMEM -> 4 bufs <= 12 MiB
    return 4 << 20              # v6e / default: 2-4 MiB tiles sit at ~86% of roofline


# --------------------------------------------------------------------------- #
# Wrapper
# --------------------------------------------------------------------------- #
def bias_correction_forward(x, weight, bias, *, min_pallas_bytes=1 << 20,
                            donate_x=False):
    """Elementwise y = w * x + b (BiasCorrectionLayer.forward).

    x:            float tensor of any shape (typically [batch, num_classes] logits).
    weight, bias: size-1 parameters (nn.Linear(1, 1) weight / bias).
    min_pallas_bytes: below this, use a plain fused XLA op (pallas fixed cost dominates).
    donate_x:     if True (and caller donates x), alias the output onto x's buffer.
    """
    orig_shape = x.shape
    dtype = x.dtype
    itemsize = jnp.dtype(dtype).itemsize
    n = int(x.size)

    w = jnp.asarray(weight, dtype=jnp.float32)
    b = jnp.asarray(bias, dtype=jnp.float32)
    if w.size != 1 or b.size != 1:
        raise ValueError("BiasCorrectionLayer weight/bias must have exactly one element")
    w = w.reshape((1,))
    b = b.reshape((1,))

    # Fast path: tiny tensors (pallas_call fixed cost dominates) and sizes not
    # divisible by 128 (a pad + final slice would re-stream the whole tensor
    # through HBM 2-3x for this purely bandwidth-bound op).
    if n == 0 or n * itemsize < min_pallas_bytes or n % _LANE != 0:
        return (x.astype(jnp.float32) * w[0] + b[0]).astype(dtype)

    # ---- Lane-dense slab with no padding: W | n, W % 128 == 0. -------------
    W = next(c for c in _W_CANDIDATES if n % c == 0)
    rows = n // W

    # dtype-aware sublane packing: (8,128) f32, (16,128) bf16/f16, (32,128) 8-bit.
    sublane = {4: 8, 2: 16, 1: 32}.get(itemsize, 8)

    # Rows per tile: per-generation byte target, >=4 grid steps for pipelining,
    # even step count so "parallel" splits evenly across v7x's two TensorCores.
    tile_bytes = _target_tile_bytes()
    steps = max(4, _cdiv(rows * W * itemsize, tile_bytes))
    steps += steps % 2
    tb = _round_up(_cdiv(rows, steps), sublane)
    if tb >= rows:
        tb = rows                               # single full-extent block (always legal)
    grid = (_cdiv(rows, tb),)                   # ragged tail handled by masked stores

    x2d = x.reshape(rows, W)                    # contiguous reshape: free (bitcast)

    # 2 input + 2 output double buffers, plus headroom; stays within every
    # generation's scoped VMEM (v5e 16/128, v6e 32/128, v7x 32/64 MiB).
    vmem_limit = min(max(4 * tb * W * itemsize + (4 << 20), 16 << 20), 32 << 20)

    out2d = pl.pallas_call(
        _bias_correction_kernel,
        out_shape=jax.ShapeDtypeStruct((rows, W), dtype),
        grid=grid,
        in_specs=[
            pl.BlockSpec(memory_space=pltpu.SMEM),      # weight (1,)
            pl.BlockSpec(memory_space=pltpu.SMEM),      # bias (1,)
            pl.BlockSpec((tb, W), lambda i: (i, 0)),    # x tile
        ],
        out_specs=pl.BlockSpec((tb, W), lambda i: (i, 0)),
        compiler_params=pltpu.CompilerParams(
            dimension_semantics=("parallel",),
            vmem_limit_bytes=vmem_limit,
        ),
        cost_estimate=pl.CostEstimate(
            flops=2 * n,
            transcendentals=0,
            bytes_accessed=2 * n * itemsize,
        ),
        input_output_aliases=({2: 0} if donate_x else {}),
    )(w, b, x2d)

    return out2d.reshape(orig_shape)


# --------------------------------------------------------------------------- #
# Self-test
# --------------------------------------------------------------------------- #
if __name__ == "__main__":
    # Deterministic parameter init, matching nn.Linear(1,1) fill_(1.0)/fill_(0.0).
    weight = jnp.ones((1,), dtype=jnp.float32)   # self.linear.weight.data.fill_(1.0)
    bias = jnp.zeros((1,), dtype=jnp.float32)    # self.linear.bias.data.fill_(0.0)

    key = jax.random.PRNGKey(0)

    # 1) Tiny logits [batch=2, classes=8] -> fast (fused XLA) path.
    x = jax.random.normal(key, (2, 8), dtype=jnp.float32)
    out = jax.block_until_ready(bias_correction_forward(x, weight, bias))
    ref = x * weight[0] + bias[0]
    assert out.shape == x.shape and out.dtype == x.dtype
    assert jnp.allclose(out, ref, atol=1e-6), "mismatch (fast path, f32)"

    # 2) 128-aligned logits, force the Pallas path (multi-step grid + masked tail).
    x2 = jax.random.normal(jax.random.PRNGKey(0), (64, 640), dtype=jnp.float32)
    out2 = jax.block_until_ready(
        bias_correction_forward(x2, weight, bias, min_pallas_bytes=0))
    ref2 = x2 * weight[0] + bias[0]
    assert out2.shape == x2.shape and out2.dtype == x2.dtype
    assert jnp.allclose(out2, ref2, atol=1e-6), "mismatch (pallas path, f32)"

    # 2b) Non-trivial weight/bias on the Pallas path (the layer is trainable).
    w2 = jnp.full((1,), 1.5, dtype=jnp.float32)
    b2 = jnp.full((1,), -0.25, dtype=jnp.float32)
    out2b = jax.block_until_ready(
        bias_correction_forward(x2, w2, b2, min_pallas_bytes=0))
    ref2b = x2 * w2[0] + b2[0]
    assert jnp.allclose(out2b, ref2b, atol=1e-5), "mismatch (pallas path, w=1.5 b=-0.25)"

    # 3) bf16, 128-aligned -> Pallas path with packed (16,128) sublane rounding.
    x3 = jax.random.normal(jax.random.PRNGKey(0), (32, 512), dtype=jnp.bfloat16)
    out3 = jax.block_until_ready(
        bias_correction_forward(x3, weight, bias, min_pallas_bytes=0))
    ref3 = (x3.astype(jnp.float32) * weight[0] + bias[0]).astype(jnp.bfloat16)
    assert out3.shape == x3.shape and out3.dtype == x3.dtype
    assert jnp.allclose(out3.astype(jnp.float32), ref3.astype(jnp.float32),
                        atol=1e-2), "mismatch (pallas path, bf16)"

    # 4) Odd, non-128-divisible class count (bf16) -> clean fallback, no pad/slice.
    x4 = jax.random.normal(jax.random.PRNGKey(0), (5, 37), dtype=jnp.bfloat16)
    out4 = jax.block_until_ready(bias_correction_forward(x4, weight, bias))
    ref4 = (x4.astype(jnp.float32) * weight[0] + bias[0]).astype(jnp.bfloat16)
    assert out4.shape == x4.shape and out4.dtype == x4.dtype
    assert jnp.allclose(out4.astype(jnp.float32), ref4.astype(jnp.float32),
                        atol=1e-2), "mismatch (fallback, bf16)"

    print("KERNEL_OK")
</pallas_src>

<mosaic_0001>
module attributes {stable_mosaic.version = 11 : i64} {
  func.func @_bias_correction_kernel(%arg0: i32, %arg1: memref<1xf32, #tpu.memory_space<smem>>, %arg2: memref<1xf32, #tpu.memory_space<smem>>, %arg3: memref<8x2048xf32, #tpu.memory_space<vmem>>, %arg4: memref<8x2048xf32, #tpu.memory_space<vmem>>) attributes {dimension_semantics = [#tpu.dimension_semantics<parallel>], iteration_bounds = array<i64: 3>, scalar_prefetch = 0 : i64, scratch_operands = 0 : i64, tpu.core_type = #tpu.core_type<tc>, window_params = [{transform_indices = @transform_0, window_bounds = array<i64: 1>}, {transform_indices = @transform_1, window_bounds = array<i64: 1>}, {transform_indices = @transform_2, window_bounds = array<i64: 8, 2048>}, {transform_indices = @transform_3, window_bounds = array<i64: 8, 2048>}]} {
    %c0 = arith.constant 0 : index
    %0 = memref.load %arg1[%c0] : memref<1xf32, #tpu.memory_space<smem>>
    %c0_0 = arith.constant 0 : index
    %1 = memref.load %arg2[%c0_0] : memref<1xf32, #tpu.memory_space<smem>>
    %c0_1 = arith.constant 0 : index
    %c0_2 = arith.constant 0 : index
    %2 = vector.load %arg3[%c0_1, %c0_2] : memref<8x2048xf32, #tpu.memory_space<vmem>>, vector<8x2048xf32>
    %3 = vector.broadcast %0 : f32 to vector<8x2048xf32>
    %4 = arith.mulf %2, %3 : vector<8x2048xf32>
    %5 = vector.broadcast %1 : f32 to vector<8x2048xf32>
    %6 = arith.addf %4, %5 : vector<8x2048xf32>
    %c0_3 = arith.constant 0 : index
    %c0_4 = arith.constant 0 : index
    %7 = vector.load %arg4[%c0_3, %c0_4] : memref<8x2048xf32, #tpu.memory_space<vmem>>, vector<8x2048xf32>
    tpu.vector_store %arg4[%c0_3, %c0_4], %6 {strides = array<i32>} : memref<8x2048xf32, #tpu.memory_space<vmem>>, vector<8x2048xf32>,
    return
  }
  func.func @transform_0(%arg0: i32) -> i32 {
    %c0_i32 = arith.constant 0 : i32
    %c0_i32_0 = arith.constant 0 : i32
    return %c0_i32 : i32
  }
  func.func @transform_1(%arg0: i32) -> i32 {
    %c0_i32 = arith.constant 0 : i32
    %c0_i32_0 = arith.constant 0 : i32
    return %c0_i32 : i32
  }
  func.func @transform_2(%arg0: i32) -> (i32, i32) {
    %c0_i32 = arith.constant 0 : i32
    %c0_i32_0 = arith.constant 0 : i32
    return %arg0, %c0_i32 : i32, i32
  }
  func.func @transform_3(%arg0: i32) -> (i32, i32) {
    %c0_i32 = arith.constant 0 : i32
    %c0_i32_0 = arith.constant 0 : i32
    return %arg0, %c0_i32 : i32, i32
  }
}

</mosaic_0001>

<bundles_post_ra>
// kernel: tpu_custom_call.1
= control target key start
LH: loop header
LB: loop body
LE: loop exit
PB: predicated region body
PF: predicated region fallthrough
CT: control target
= control target key end

     0   :  { %s748_s0 = inlined_call_operand.<no memory space> [shape: f32[1], index: 0, kind: input, shape index: {}]   ;;  %s749_s1 = inlined_call_operand.<no memory space> [shape: f32[1], index: 1, kind: input, shape index: {}]   ;;  %s750_s2 = inlined_call_operand.hbm [shape: f32[20,2048], index: 2, kind: input, shape index: {}]   ;;  %s751_s3 = inlined_call_operand.hbm [shape: f32[20,2048], index: 3, kind: output, shape index: {}]  }
   0x1   :  { %8 = sst [smem:[#allocation2]] %s748_s0 }
   0x2   :  { %9 = sst [smem:[#allocation3]] %s749_s1 }
   0x3   :  { %10 = vsyncpa [#allocation5], 0 }
   0x4   :  { %12 = vsyncpa [#allocation5 + $0x1], 0 }
   0x5   :  { %13 = vsyncpa [#allocation6], 0 }
   0x6   :  { %15 = vsyncpa [#allocation6 + $0x1], 0  ;;  %s530_s16 = smov 0   ;;  %s532_s17 = smov 0  }
   0x7   :  { %s534_s18 = smov 0   ;;  %s536_s19 = smov 0  }
   0x8 LB: > { %s551_s0 = sadd.s32 4294967295, %s500_s19   ;;  %s342_s1 = sadd.s32 4294967294, %s500_s19   ;;  %s500_s19 = sphi %s536_s19, %s765_s19   ;;  %s496_s18 = sphi %s534_s18, %s764_s18   ;;  %s492_s17 = sphi %s532_s17, %s763_s17   ;;  %s488_s16 = sphi %s530_s16, %s762_s16  }
   0x9   : > { %s555_s20 = sadd.s32 1, %s500_s19   ;;  %s70_s21 = sadd.s32 1, %s496_s18 }
   0xa   : > { %s67_s22 = ssub.s32 %s500_s19, %s555_s20  ;;  %p77_p0 = scmp.ne.s32.totalorder %s496_s18, %s492_s17 }
   0xb   : > { %p68_p1 = scmp.eq.s32.totalorder %s67_s22, 0  ;;  %p78_p2 = scmp.eq.s32.totalorder %s500_s19, 0 }
   0xc   : > { %p83_p3 = scmp.ne.s32.totalorder %s492_s17, %s488_s16  ;;  %p84_p4 = scmp.eq.s32.totalorder %s551_s0, 0 }
   0xd   : > { %s567_s23 = scalar_select %p68_p1, %s496_s18, %s70_s21  }
   0xe   : > { %p569_p5 = por %p78_p2, %p77_p0  ;;  %p573_p6 = por %p84_p4, %p83_p3 }
   0xf   : > { %p107_p7 = scmp.eq.s32.totalorder %s551_s0, 2  ;;  %p113_p8 = scmp.eq.s32.totalorder %s342_s1, 2 }
  0x10   : > { %p370_p9 = scmp.lt.s32.totalorder %s500_s19, 3  ;;  %s139_s28 = sand.u32 1, %s496_s18  }
  0x11   : > { %p579_p10 = por %p107_p7, %p77_p0  ;;  %p583_p11 = por %p113_p8, %p83_p3 }
  0x12   : > { %s356_s29 = sshll.u32 %s500_s19, 11  ;;  %s345_s30 = sshll.u32 %s139_s28, 7 }
  0x13   : > { %s755_s26 = scalar_select %p579_p10, 1, 0 }
  0x14   : > { %s756_s27 = scalar_select %p583_p11, 1, 0 }
  0x15   : > { %s592_s6 = scalar_lea.hbm %s750_s2, %s356_s29  ;;  %s143_s7 = scalar_lea.vmem [#allocation4], %s345_s30 }
  0x16   : > { %s151_s8 = sshll.u32 %s143_s7, 4  ;;  %p596_p12 = pnand %p370_p9, %p569_p5  ;;  %s600_s8 = int_to_ptr.vmem [resolvable:$true] %s151_s8 }
  0x17   : > { %s140_s10 = scalar_lea.sflag [#allocation5], %s139_s28  ;;  %s404_s11 = scalar_lea.hbm %s592_s6, 2048 }
  0x18   : > { %p405_p1 = scmp.ne.s32.totalorder %s592_s6, %s404_s11  ;;  %p406_p2 = pneg %p596_p12 }
  0x19   : > { %s409_s14 = scalar_lea.hbm %s750_s2, 6144  ;;  %p410_p5 = scmp.lt.u32.totalorder %s592_s6, %s750_s2 }
  0x1a   : > { %p407_p3 = pnand %p406_p2, %p405_p1  ;;  %p411_p7 = scmp.lt.u32.totalorder %s409_s14, %s404_s11 }
  0x1b   : > { %p413_p9 = scmp.lt.u32.totalorder %s404_s11, %s592_s6 }
  0x1c   : > { %p408_p4 = pneg %p407_p3  ;;  %p412_p8 = por %p411_p7, %p410_p5 }
  0x1e   : > { %p414_p13 = por %p413_p9, %p412_p8 }
  0x20   : > { %p415_p0 = pnand %p414_p13, %p408_p4 }
  0x22   : > { %418 = shalt.err (!%p415_p0)
}
  0x23   : > { %s419_s21 = scalar_lea.vmem %s600_s8, 2048  ;;  %s502_s22 = smov [#allocation4]  }
  0x24   : > { %p420_p1 = scmp.ne.s32.totalorder %s600_s8, %s419_s21  ;;  %s424_s24 = sshll.u32 %s502_s22, 4  ;;  %s425_s24 = int_to_ptr.vmem [resolvable:$false] %s424_s24 }
  0x25   : > { %s426_s28 = scalar_lea.vmem %s425_s24, 4096  ;;  %p427_p10 = scmp.lt.s32.totalorder %s600_s8, %s425_s24 }
  0x26   : > { %p422_p3 = pnand %p420_p1, %p406_p2  ;;  %p428_p5 = scmp.lt.s32.totalorder %s426_s28, %s419_s21 }
  0x28   : > { %p423_p11 = pneg %p422_p3  ;;  %p429_p7 = por %p428_p5, %p427_p10 }
  0x2a   : > { %p430_p8 = pnand %p429_p7, %p423_p11 }
  0x2c   : > { %433 = shalt.err (!%p430_p8)
}
  0x2d   : > { %365 = dma.hbm_to_vmem [thread:$0]  (!%p596_p12), %s592_s6, 2048, %s600_s8, %s140_s10  }
  0x2e   : > { %p758_p13 = scmp.lt.s32.totalorder %s500_s19, 4  ;;  %p759_p0 = scmp.ge.s32.totalorder %s500_s19, 1 }
  0x30   : > { %p157_p2 = pnand %p759_p0, %p758_p13 }
  0x31   : > { %s634_s29 = sand.u32 (!%p157_p2), 1, %s492_s17  }
  0x32   : > { %160 = sbr.rel (%p157_p2) target bundleno = 91 (0x5b), region = 32  ;;  %s349_s30 = sshll.u32 (!%p157_p2), %s634_s29, 7 }
  0x33   : > { %s163_s4 = scalar_lea.sflag (!%p157_p2), [#allocation5], %s634_s29  ;;  %s640_s5 = scalar_lea.vmem (!%p157_p2), [#allocation4], %s349_s30 }
  0x39   : > { %479 = dma.done.wait (%p573_p6), %s163_s4, 2048  }
  0x3a   : > { %481 = vsyncadd (%p573_p6), %s163_s4, 4294965248  ;;  %s189_s6 = sld [smem:[#allocation2]]  ;;  %v191_v0 = vld [vmem:[%s640_s5] sm:$0xff]  ;;  %v192_v3 = vld [vmem:[%s640_s5 + $0x8] sm:$0xff]  ;;  %s669_s25 = scalar_lea.vmem [#allocation7], %s349_s30 }
  0x3b   : > { %s190_s7 = sld [smem:[#allocation3]]  ;;  %v193_v6 = vld [vmem:[%s640_s5 + $0x10] sm:$0xff]  ;;  %v194_v7 = vld [vmem:[%s640_s5 + $0x18] sm:$0xff]  ;;  %v195_v8 = vld [vmem:[%s640_s5 + $0x20] sm:$0xff]  ;;  %s357_s8 = sshll.u32 %s551_s0, 11 }
  0x3c   : > { %v196_v12 = vld [vmem:[%s640_s5 + $0x28] sm:$0xff]  ;;  %v197_v13 = vld [vmem:[%s640_s5 + $0x30] sm:$0xff]  ;;  %v198_v14 = vld [vmem:[%s640_s5 + $0x38] sm:$0xff]  ;;  %s272_s9 = sshll.u32 %s669_s25, 4  ;;  %s702_s11 = scalar_lea.hbm %s751_s3, %s357_s8  ;;  %s704_s9 = int_to_ptr.vmem [resolvable:$true] %s272_s9 }
  0x3d   : > { %v199_v19 = vld [vmem:[%s640_s5 + $0x40] sm:$0xff]  ;;  %v200_v20 = vld [vmem:[%s640_s5 + $0x48] sm:$0xff]  ;;  %v201_v21 = vld [vmem:[%s640_s5 + $0x50] sm:$0xff]  ;;  %s258_s12 = scalar_lea.sflag [#allocation6], %s634_s29  ;;  %s434_s13 = scalar_lea.vmem %s704_s9, 2048 }
  0x3e   : > { %v202_v26 = vld [vmem:[%s640_s5 + $0x58] sm:$0xff]  ;;  %v203_v27 = vld [vmem:[%s640_s5 + $0x60] sm:$0xff]  ;;  %v204_v28 = vld [vmem:[%s640_s5 + $0x68] sm:$0xff]  ;;  %p435_p6 = scmp.ne.s32.totalorder %s704_s9, %s434_s13  ;;  %p760_p10 = scmp.ne.s32.totalorder %s755_s26, 0 }
  0x3f   : > { %v205_v33 = vld [vmem:[%s640_s5 + $0x70] sm:$0xff]  ;;  %v206_v34 = vld [vmem:[%s640_s5 + $0x78] sm:$0xff]  ;;  %s503_s14 = smov [#allocation7]  }
  0x40   : > { %v207_v1 = vstv %s189_s6  ;;  %p436_p11 = pnand %p435_p6, %p760_p10  ;;  %s438_s15 = sshll.u32 %s503_s14, 4  ;;  %s439_s15 = int_to_ptr.vmem [resolvable:$false] %s438_s15 }
  0x41   : > { %v647_v2 = vstv %s190_s7  ;;  %v208_v4 = vmul.f32 %v207_v1, %v191_v0  ;;  %v209_v5 = vmul.f32 %v207_v1, %v192_v3  ;;  %v210_v9 = vmul.f32 %v207_v1, %v193_v6  ;;  %s440_s1 = scalar_lea.vmem %s439_s15, 4096  ;;  %p441_p4 = scmp.lt.s32.totalorder %s704_s9, %s439_s15 }
  0x42   : > { %v211_v10 = vmul.f32 %v207_v1, %v194_v7  ;;  %v212_v11 = vmul.f32 %v207_v1, %v195_v8  ;;  %v213_v17 = vmul.f32 %v207_v1, %v196_v12  ;;  %v214_v18 = vmul.f32 %v207_v1, %v197_v13  ;;  %p437_p12 = pneg %p436_p11  ;;  %p442_p9 = scmp.lt.s32.totalorder %s440_s1, %s434_s13 }
  0x43   : > { %v225_v15 = vadd.f32 %v647_v2, %v208_v4  ;;  %v226_v16 = vadd.f32 %v647_v2, %v209_v5  ;;  %v227_v22 = vadd.f32 %v647_v2, %v210_v9  ;;  %v215_v25 = vmul.f32 %v207_v1, %v198_v14 }
  0x44   : > { %v228_v23 = vadd.f32 %v647_v2, %v211_v10  ;;  %v229_v24 = vadd.f32 %v647_v2, %v212_v11  ;;  %v230_v29 = vadd.f32 %v647_v2, %v213_v17  ;;  %v231_v30 = vadd.f32 %v647_v2, %v214_v18  ;;  %p443_p1 = por %p442_p9, %p441_p4 }
  0x45   : > { %241 = vst [vmem:[%s669_s25] sm:$0xff] %v225_v15  ;;  %242 = vst [vmem:[%s669_s25 + $0x8] sm:$0xff] %v226_v16  ;;  %v216_v31 = vmul.f32 %v207_v1, %v199_v19  ;;  %v217_v32 = vmul.f32 %v207_v1, %v200_v20  ;;  %v232_v35 = vadd.f32 %v647_v2, %v215_v25 }
  0x46   : > { %243 = vst [vmem:[%s669_s25 + $0x10] sm:$0xff] %v227_v22  ;;  %244 = vst [vmem:[%s669_s25 + $0x18] sm:$0xff] %v228_v23  ;;  %v218_v36 = vmul.f32 %v207_v1, %v201_v21  ;;  %v219_v37 = vmul.f32 %v207_v1, %v202_v26  ;;  %v220_v38 = vmul.f32 %v207_v1, %v203_v27  ;;  %p444_p3 = pnand %p443_p1, %p437_p12 }
  0x47   : > { %245 = vst [vmem:[%s669_s25 + $0x20] sm:$0xff] %v229_v24  ;;  %246 = vst [vmem:[%s669_s25 + $0x28] sm:$0xff] %v230_v29  ;;  %v233_v39 = vadd.f32 %v647_v2, %v216_v31  ;;  %v234_v40 = vadd.f32 %v647_v2, %v217_v32  ;;  %v221_v41 = vmul.f32 %v207_v1, %v204_v28 }
  0x48   : > { %247 = vst [vmem:[%s669_s25 + $0x30] sm:$0xff] %v231_v30  ;;  %v222_v42 = vmul.f32 %v207_v1, %v205_v33  ;;  %248 = vst [vmem:[%s669_s25 + $0x38] sm:$0xff] %v232_v35  ;;  %v235_v43 = vadd.f32 %v647_v2, %v218_v36  ;;  %v236_v44 = vadd.f32 %v647_v2, %v219_v37 }
  0x49   : > { %v237_v45 = vadd.f32 %v647_v2, %v220_v38  ;;  %v223_v46 = vmul.f32 %v207_v1, %v206_v34  ;;  %249 = vst [vmem:[%s669_s25 + $0x40] sm:$0xff] %v233_v39  ;;  %250 = vst [vmem:[%s669_s25 + $0x48] sm:$0xff] %v234_v40  ;;  %v238_v47 = vadd.f32 %v647_v2, %v221_v41 }
  0x4a   : > { %v239_v48 = vadd.f32 %v647_v2, %v222_v42  ;;  %251 = vst [vmem:[%s669_s25 + $0x50] sm:$0xff] %v235_v43  ;;  %252 = vst [vmem:[%s669_s25 + $0x58] sm:$0xff] %v236_v44 }
  0x4b   : > { %253 = vst [vmem:[%s669_s25 + $0x60] sm:$0xff] %v237_v45  ;;  %v240_v49 = vadd.f32 %v647_v2, %v223_v46  ;;  %254 = vst [vmem:[%s669_s25 + $0x68] sm:$0xff] %v238_v47 }
  0x4c   : > { %255 = vst [vmem:[%s669_s25 + $0x70] sm:$0xff] %v239_v48 }
  0x4d   : > { %256 = vst [vmem:[%s669_s25 + $0x78] sm:$0xff] %v240_v49 }
  0x4e   : > { %447 = shalt.err (!%p444_p3)
}
  0x4f   : > { %s448_s21 = scalar_lea.hbm %s702_s11, 2048  ;;  %s452_s28 = scalar_lea.hbm %s751_s3, 6144 }
  0x50   : > { %p449_p5 = scmp.ne.s32.totalorder %s702_s11, %s448_s21  ;;  %p453_p13 = scmp.lt.u32.totalorder %s702_s11, %s751_s3 }
  0x51   : > { %p454_p0 = scmp.lt.u32.totalorder %s452_s28, %s448_s21  ;;  %p456_p6 = scmp.lt.u32.totalorder %s448_s21, %s702_s11 }
  0x52   : > { %p450_p7 = pnand %p449_p5, %p760_p10 }
  0x53   : > { %p455_p2 = por %p454_p0, %p453_p13 }
  0x54   : > { %p451_p8 = pneg %p450_p7 }
  0x55   : > { %p457_p11 = por %p456_p6, %p455_p2 }
  0x57   : > { %p458_p12 = pnand %p457_p11, %p451_p8 }
  0x59   : > { %461 = shalt.err (!%p458_p12)
}
  0x5a   : > { %360 = dma.vmem_to_hbm [thread:$0]  (%p760_p10), %s704_s9, 2048, %s702_s11, %s258_s12  }
  0x5b PF: > { %p371_p4 = scmp.ge.s32.totalorder %s500_s19, 2  ;;  %s284_s4 = sand.u32 1, %s488_s16  }
  0x5c   : > { %p761_p9 = scmp.ne.s32.totalorder %s756_s27, 0  ;;  %s285_s5 = scalar_lea.sflag [#allocation6], %s284_s4 }
  0x5e   : > { %p367_p1 = pnand %p371_p4, %p761_p9 }
  0x60   : > { %483 = dma.done.wait (!%p367_p1), %s285_s5, 2048  }
  0x61   : > { %485 = vsyncadd (!%p367_p1), %s285_s5, 4294965248  ;;  %p18_p3 = scmp.ge.s32.totalorder %s555_s20, 5   ;;  %s762_s16 = smov %s492_s17 }
  0x62   : > { %s763_s17 = smov %s496_s18  ;;  %s764_s18 = smov %s567_s23 }
  0x63   : > { %s765_s19 = smov %s555_s20  ;;  %20 = sbr.rel (!%p18_p3) target bundleno = 8 (0x8), region = 77 }
  0x6a   :  { %290 = vsyncpa [#allocation5], 1 }
  0x6b   :  { %292 = vsyncpa [#allocation5 + $0x1], 1 }
  0x6c   :  { %293 = vsyncpa [#allocation6], 1 }
  0x6d   :  { %295 = vsyncpa [#allocation6 + $0x1], 1 }

</bundles_post_ra>
